<compile_context>
chip_gen: v5e
topology: v5e:2x2
jax: 0.10.0
libtpu: 0.0.40
codegen_flags: <defaults>
</compile_context>

<pallas_src>
import functools
import math

import jax
import jax.numpy as jnp
from jax.experimental import pallas as pl
from jax.experimental.pallas import tpu as pltpu


# -----------------------------------------------------------------------------
# Hardware-aware tiling / compile configuration
# -----------------------------------------------------------------------------
def _vmem_budgets():
    """(vmem_limit_bytes, streaming-block budget). Big tiles on 128-MiB-VMEM
    chips (v5e/v6e), conservative on v7x (64 MiB physical)."""
    try:
        info = pltpu.get_tpu_info()
        vmem = int(getattr(info, "vmem_capacity_bytes", 64 * 1024 * 1024))
    except Exception:  # non-TPU tracing / query unavailable -> conservative
        vmem = 64 * 1024 * 1024
    if vmem >= 100 * 1024 * 1024:        # v5e / v6e (128 MiB VMEM)
        return 96 * 1024 * 1024, 14 * 1024 * 1024
    return 32 * 1024 * 1024, 6 * 1024 * 1024   # v7x (64 MiB VMEM)


_VMEM_LIMIT_BYTES, _STREAM_BUDGET_BYTES = _vmem_budgets()

# Activations stored between kernels in bf16 (every kernel here is HBM-bound,
# so halving activation bytes is close to the full win).  Matmuls accumulate
# in f32 and all elementwise math is done in f32 inside the kernels.
_ACT_DTYPE = jnp.bfloat16
_MXU_DTYPE = jnp.bfloat16       # weight storage / MXU operand dtype


def _choose_tile_l(length, streamed_bytes_per_col, scratch_bytes_per_col=0, batch=1):
    """Largest lane-dense (multiple-of-128) L tile such that the double-buffered
    streamed blocks plus per-column f32 in-kernel intermediates fit the VMEM
    streaming budget; full extent for short sequences (with a v7x 2-TC guard)."""
    if length <= 512:
        # v7x megacore: keep the parallel grid at >= 2 programs when batch == 1.
        if batch == 1 and length >= 256 and length % 256 == 0:
            return length // 2
        return length                     # full array dim is always a legal block dim
    denom = max(2 * streamed_bytes_per_col + scratch_bytes_per_col, 1)
    max_tl = (_STREAM_BUDGET_BYTES // denom) // 128 * 128
    max_tl = max(128, min(max_tl, 4096))
    for cand in range(max_tl, 127, -128):  # prefer a tile that divides L (no masked edge)
        if length % cand == 0:
            return cand
    return max_tl


def _compiler_params():
    return pltpu.CompilerParams(
        dimension_semantics=("parallel", "parallel"),
        vmem_limit_bytes=_VMEM_LIMIT_BYTES,
    )


# -----------------------------------------------------------------------------
# In-kernel math helpers
# -----------------------------------------------------------------------------
_SQRT1_2 = 0.7071067811865476


def _erf_approx(z):
    # Abramowitz & Stegun 7.1.26 rational approximation, |error| <= 1.5e-7
    # (i.e. exact at f32 precision).  Lets exact GELU fuse into the conv/FF
    # kernels with only Mosaic-supported primitives (exp, mul/add, select).
    a1, a2, a3, a4, a5 = (0.254829592, -0.284496736, 1.421413741,
                          -1.453152027, 1.061405429)
    p = 0.3275911
    sign = jnp.where(z < 0.0, -1.0, 1.0)
    za = jnp.abs(z)
    t = 1.0 / (1.0 + p * za)
    poly = ((((a5 * t + a4) * t + a3) * t + a2) * t + a1) * t
    return sign * (1.0 - poly * jnp.exp(-za * za))


def _gelu_exact(x):
    return 0.5 * x * (1.0 + _erf_approx(x * _SQRT1_2))


def _tln_body(x, s, m):
    # TransposedLN: normalize over channel axis, biased std (torch.std_mean(unbiased=False)).
    mu = jnp.mean(x, axis=0, keepdims=True)                   # (1, TL)
    var = jnp.mean((x - mu) ** 2, axis=0, keepdims=True)
    inv_std = jax.lax.rsqrt(var)    # EUP rsqrt; no eps, matching the reference exactly
    return (s * inv_std) * (x - mu + m)


# -----------------------------------------------------------------------------
# Pallas kernels
# -----------------------------------------------------------------------------
def _pw_conv_kernel(x_ref, w_ref, b_ref, o_ref, *, act, cin_is_one):
    # x_ref: (1, Cin, TL), w_ref: (Cout, Cin) [bf16], b_ref: (Cout, 1) f32
    x = x_ref[0]
    if cin_is_one:
        # Cin == 1: a K=1 MXU matmul wastes an MXU push + (8,128) padding of the
        # (1, TL) operand; a VPU broadcast multiply is cheaper.
        y = w_ref[...].astype(jnp.float32) * x.astype(jnp.float32)      # (Cout, TL)
    else:
        y = jnp.dot(w_ref[...], x.astype(w_ref.dtype),
                    preferred_element_type=jnp.float32)                 # f32 accumulation
    y = y + b_ref[...]
    if act == "relu":
        y = jnp.maximum(y, 0.0)
    elif act == "gelu":
        y = _gelu_exact(y)
    o_ref[0] = y.astype(o_ref.dtype)


def pw_conv(x, w, b, act="none", out_dtype=None):
    """Pointwise Conv1d (kernel_size=1), length-tiled.  x: (B, Cin, L) -> (B, Cout, L).
    Optionally fuses a ReLU / exact-GELU epilogue."""
    B, Cin, L = x.shape
    Cout = w.shape[0]
    if out_dtype is None:
        out_dtype = _ACT_DTYPE
    streamed = x.dtype.itemsize * Cin + jnp.dtype(out_dtype).itemsize * Cout
    TL = _choose_tile_l(L, streamed, 4 * Cout, batch=B)
    grid = (B, pl.cdiv(L, TL))

    return pl.pallas_call(
        functools.partial(_pw_conv_kernel, act=act, cin_is_one=(Cin == 1)),
        out_shape=jax.ShapeDtypeStruct((B, Cout, L), out_dtype),
        grid=grid,
        in_specs=[
            pl.BlockSpec((1, Cin, TL), lambda bi, li: (bi, 0, li)),
            pl.BlockSpec((Cout, Cin), lambda bi, li: (0, 0)),   # weights stay resident
            pl.BlockSpec((Cout, 1), lambda bi, li: (0, 0)),
        ],
        out_specs=pl.BlockSpec((1, Cout, TL), lambda bi, li: (bi, 0, li)),
        compiler_params=_compiler_params(),
    )(x, w, b)


def _tln_kernel(x_ref, s_ref, m_ref, o_ref):
    y = _tln_body(x_ref[0].astype(jnp.float32), s_ref[0, 0], m_ref[0, 0])
    o_ref[0] = y.astype(o_ref.dtype)


def _tln_bias_kernel(x_ref, s_ref, m_ref, pt_ref, o_ref):
    y = _tln_body(x_ref[0].astype(jnp.float32), s_ref[0, 0], m_ref[0, 0])
    y = y + pt_ref[0].astype(jnp.float32)                     # fused (C,1) broadcast add
    o_ref[0] = y.astype(o_ref.dtype)


def tln(x, s_param, m_param, part_t=None, out_dtype=None):
    """TransposedLN over channels, length-tiled.  Optionally fuses the
    `y + part_t[:, :, None]` diffusion-embedding broadcast add (part_t: (B, C, 1))."""
    B, C, L = x.shape
    if out_dtype is None:
        out_dtype = _ACT_DTYPE
    streamed = (x.dtype.itemsize + jnp.dtype(out_dtype).itemsize) * C
    TL = _choose_tile_l(L, streamed, 8 * C, batch=B)
    grid = (B, pl.cdiv(L, TL))
    smem = pl.BlockSpec(memory_space=pltpu.MemorySpace.SMEM)  # (1,1) scalars via SMEM

    in_specs = [pl.BlockSpec((1, C, TL), lambda bi, li: (bi, 0, li)), smem, smem]
    args = [x, s_param, m_param]
    kernel = _tln_kernel
    if part_t is not None:
        in_specs.append(pl.BlockSpec((1, C, 1), lambda bi, li: (bi, 0, 0)))
        args.append(part_t)
        kernel = _tln_bias_kernel

    return pl.pallas_call(
        kernel,
        out_shape=jax.ShapeDtypeStruct((B, C, L), out_dtype),
        grid=grid,
        in_specs=in_specs,
        out_specs=pl.BlockSpec((1, C, TL), lambda bi, li: (bi, 0, li)),
        compiler_params=_compiler_params(),
    )(*args)


def _ff_block_kernel(x_ref, y_ref, s_ref, m_ref, w1_ref, b1_ref, w2_ref, b2_ref,
                     *rest, add_skip):
    if add_skip:
        skip_ref, o_ref = rest
    else:
        (o_ref,) = rest
    # x2 = x + S4(x), fused (no HBM materialization of x2)
    x2 = x_ref[0].astype(jnp.float32) + y_ref[0].astype(jnp.float32)     # (C, TL)
    z = _tln_body(x2, s_ref[0, 0], m_ref[0, 0])                          # norm2
    h = jnp.dot(w1_ref[...], z.astype(w1_ref.dtype),
                preferred_element_type=jnp.float32) + b1_ref[...]        # (d_inner, TL)
    h = _gelu_exact(h)                                                    # stays in VMEM
    out = jnp.dot(w2_ref[...], h.astype(w2_ref.dtype),
                  preferred_element_type=jnp.float32) + b2_ref[...]      # (C, TL)
    out = out + x2                                                        # fused FF residual
    if add_skip:
        out = out + skip_ref[0].astype(jnp.float32)                       # fused U-Net skip add
    o_ref[0] = out.astype(o_ref.dtype)


def ff_block(x, y, s_param, m_param, w1, b1, w2, b2, skip=None):
    """Fused (x + y) -> TransposedLN -> Conv1x1 -> GELU -> Conv1x1 -> +residual
    [-> +U-Net skip].  Removes the HBM round-trips of x2 and of the d_inner-wide
    intermediate h (the largest activation in the block)."""
    B, C, L = x.shape
    d_inner = w1.shape[0]
    act_b = jnp.dtype(_ACT_DTYPE).itemsize
    streamed = act_b * C * (3 + (1 if skip is not None else 0))
    scratch = 4 * (3 * C + d_inner)       # f32 x2/z/out + GELU intermediate per column
    TL = _choose_tile_l(L, streamed, scratch, batch=B)
    grid = (B, pl.cdiv(L, TL))
    smem = pl.BlockSpec(memory_space=pltpu.MemorySpace.SMEM)

    in_specs = [
        pl.BlockSpec((1, C, TL), lambda bi, li: (bi, 0, li)),
        pl.BlockSpec((1, C, TL), lambda bi, li: (bi, 0, li)),
        smem, smem,
        pl.BlockSpec((d_inner, C), lambda bi, li: (0, 0)),   # weights stay resident
        pl.BlockSpec((d_inner, 1), lambda bi, li: (0, 0)),
        pl.BlockSpec((C, d_inner), lambda bi, li: (0, 0)),
        pl.BlockSpec((C, 1), lambda bi, li: (0, 0)),
    ]
    args = [x, y, s_param, m_param, w1, b1, w2, b2]
    if skip is not None:
        in_specs.append(pl.BlockSpec((1, C, TL), lambda bi, li: (bi, 0, li)))
        args.append(skip)

    return pl.pallas_call(
        functools.partial(_ff_block_kernel, add_skip=skip is not None),
        out_shape=jax.ShapeDtypeStruct((B, C, L), _ACT_DTYPE),
        grid=grid,
        in_specs=in_specs,
        out_specs=pl.BlockSpec((1, C, TL), lambda bi, li: (bi, 0, li)),
        compiler_params=_compiler_params(),
    )(*args)


# -----------------------------------------------------------------------------
# Plain-JAX glue
# -----------------------------------------------------------------------------
def calc_diffusion_step_embedding(diffusion_steps, dim_in):
    half = dim_in // 2
    e = math.log(10000.0) / (half - 1)
    freqs = jnp.exp(jnp.arange(half, dtype=jnp.float32) * -e)
    args = diffusion_steps.astype(jnp.float32) * freqs[None, :]     # (B, half)
    return jnp.concatenate([jnp.sin(args), jnp.cos(args)], axis=1)  # (B, dim_in)


def dense_swish(x, w, b):
    # Tiny (few-KB) MLP matmul: left to XLA — a pallas_call launch would cost
    # more than the compute itself.
    y = x @ w + b
    return y * jax.nn.sigmoid(y)


def s4_standin(x, k_fwd, k_bwd, D):
    # TODO(synk): the S4 module source is not provided in the reference; substituted with a
    # bidirectional per-channel (depthwise) global FIR convolution + skip connection, which
    # matches the structural role of S4(d_model, L, bidirectional=True) at inference.
    xf = x.astype(jnp.float32)
    B, H, L = x.shape
    n = 2 * L
    yf = jnp.fft.irfft(jnp.fft.rfft(xf, n=n) * jnp.fft.rfft(k_fwd, n=n)[None], n=n)[..., :L]
    xr = xf[..., ::-1]
    yb = jnp.fft.irfft(jnp.fft.rfft(xr, n=n) * jnp.fft.rfft(k_bwd, n=n)[None], n=n)[..., :L]
    yb = yb[..., ::-1]
    return (yf + yb + D[None, :, None] * xf).astype(x.dtype)


def down_rearrange(x, s):
    # '... h (l s) -> ... (h s) l'
    B, H, L = x.shape
    return x.reshape(B, H, L // s, s).transpose(0, 1, 3, 2).reshape(B, H * s, L // s)


def up_rearrange(x, s):
    # '... (h s) l -> ... h (l s)'
    B, HS, L = x.shape
    H = HS // s
    return x.reshape(B, H, s, L).transpose(0, 1, 3, 2).reshape(B, H, L * s)


# -----------------------------------------------------------------------------
# Parameter construction (deterministic, synthetic)
# -----------------------------------------------------------------------------
class KeyGen:
    def __init__(self, seed):
        self.key = jax.random.PRNGKey(seed)

    def __call__(self):
        self.key, sub = jax.random.split(self.key)
        return sub


def conv_pw_params(kg, cin, cout):
    # Matmul weights pre-cast to the MXU dtype once (halves weight DMA and
    # removes per-grid-step VPU casts); biases stay f32 (added post-accumulation).
    w = (jax.random.normal(kg(), (cout, cin), jnp.float32)
         * math.sqrt(2.0 / cin)).astype(_MXU_DTYPE)
    b = 0.01 * jax.random.normal(kg(), (cout, 1), jnp.float32)
    return w, b


def dense_params(kg, din, dout):
    w = jax.random.normal(kg(), (din, dout), jnp.float32) / math.sqrt(din)
    b = 0.01 * jax.random.normal(kg(), (1, dout), jnp.float32)
    return w, b


def make_residual_params(kg, H, Lcur, embed_out, ff_expand):
    d_inner = ff_expand * H
    fc_t_w, fc_t_b = dense_params(kg, embed_out, H)
    ff_w1, ff_b1 = conv_pw_params(kg, H, d_inner)
    ff_w2, ff_b2 = conv_pw_params(kg, d_inner, H)
    return {
        "fc_t_w": fc_t_w, "fc_t_b": fc_t_b,
        "norm1_s": jnp.ones((1, 1), jnp.float32), "norm1_m": jnp.zeros((1, 1), jnp.float32),
        "norm2_s": jnp.ones((1, 1), jnp.float32), "norm2_m": jnp.zeros((1, 1), jnp.float32),
        "s4_kf": 0.1 * jax.random.normal(kg(), (H, Lcur), jnp.float32) / Lcur,
        "s4_kb": 0.1 * jax.random.normal(kg(), (H, Lcur), jnp.float32) / Lcur,
        "s4_D": jax.random.normal(kg(), (H,), jnp.float32),
        "ff_w1": ff_w1, "ff_b1": ff_b1, "ff_w2": ff_w2, "ff_b2": ff_b2,
    }


def init_sashimi_params(cfg):
    kg = KeyGen(0)
    d_model, n_layers, pool, expand, ff, L = (
        cfg["d_model"], cfg["n_layers"], cfg["pool"], cfg["expand"], cfg["ff"], cfg["L"])
    embed_in, embed_mid, embed_out = cfg["embed_in"], cfg["embed_mid"], cfg["embed_out"]

    params = {}
    params["init_w"], params["init_b"] = conv_pw_params(kg, cfg["in_channels"], d_model)
    params["fc_t1_w"], params["fc_t1_b"] = dense_params(kg, embed_in, embed_mid)
    params["fc_t2_w"], params["fc_t2_b"] = dense_params(kg, embed_mid, embed_out)

    H, Lc = d_model, L
    d_layers = []
    for p in pool:
        for _ in range(n_layers):  # unet=True
            d_layers.append(("res", make_residual_params(kg, H, Lc, embed_out, ff)))
        w, b = conv_pw_params(kg, H * p, H * expand)
        d_layers.append(("down", {"w": w, "b": b, "pool": p}))
        Lc //= p
        H *= expand
    c_layers = [("res", make_residual_params(kg, H, Lc, embed_out, ff)) for _ in range(n_layers)]
    u_layers = []
    for p in pool[::-1]:
        H //= expand
        Lc *= p
        w, b = conv_pw_params(kg, H * expand, H * p)
        u_layers.append(("up", {"w": w, "b": b, "pool": p}))
        for _ in range(n_layers):
            u_layers.append(("res", make_residual_params(kg, H, Lc, embed_out, ff)))

    params["d_layers"], params["c_layers"], params["u_layers"] = d_layers, c_layers, u_layers
    params["norm_s"] = jnp.ones((1, 1), jnp.float32)
    params["norm_m"] = jnp.zeros((1, 1), jnp.float32)
    params["final_w1"], params["final_b1"] = conv_pw_params(kg, d_model, d_model)
    # ZeroConv1d: zero-initialized, padded up to a multiple of 8 output channels so the
    # Pallas store is sublane-dense; the padded rows are sliced off in the forward pass.
    cpad = -(-cfg["out_channels"] // 8) * 8
    params["final_w2"] = jnp.zeros((cpad, d_model), _MXU_DTYPE)
    params["final_b2"] = jnp.zeros((cpad, 1), jnp.float32)
    return params


# -----------------------------------------------------------------------------
# Forward pass
# -----------------------------------------------------------------------------
def residual_block(x, emb, p, skip=None):
    # DiffWaveBlock with mel_spec=None.
    # TODO(synk): mel conditioning path (ConvTranspose2d upsampling + mel_conv) not
    # implemented because mel_spec is None in this run.
    part_t = (emb @ p["fc_t_w"] + p["fc_t_b"])[:, :, None]          # (B, H, 1), tiny (XLA)
    y = tln(x, p["norm1_s"], p["norm1_m"], part_t=part_t)            # fused norm1 + emb add
    y = s4_standin(y, p["s4_kf"], p["s4_kb"], p["s4_D"])
    # Fused: x2 = x + y, norm2, FF(W1 + GELU + W2), + x2 residual, + optional U-Net skip.
    return ff_block(x, y, p["norm2_s"], p["norm2_m"],
                    p["ff_w1"], p["ff_b1"], p["ff_w2"], p["ff_b2"], skip=skip)


def apply_layer(kind, p, x, emb, skip=None):
    if kind == "res":
        return residual_block(x, emb, p, skip=skip)
    if kind == "down":
        return pw_conv(down_rearrange(x, p["pool"]), p["w"], p["b"])
    if kind == "up":
        y = up_rearrange(pw_conv(x, p["w"], p["b"]), p["pool"])
        return y if skip is None else y + skip
    raise ValueError(kind)


def sashimi_forward(params, cfg, audio, diffusion_steps):
    x = pw_conv(audio, params["init_w"], params["init_b"], act="relu")

    emb = calc_diffusion_step_embedding(diffusion_steps, cfg["embed_in"])
    emb = dense_swish(emb, params["fc_t1_w"], params["fc_t1_b"])
    emb = dense_swish(emb, params["fc_t2_w"], params["fc_t2_b"])

    outputs = []
    for kind, p in params["d_layers"]:
        outputs.append(x)
        x = apply_layer(kind, p, x, emb)
    outputs.append(x)
    for kind, p in params["c_layers"]:
        x = apply_layer(kind, p, x, emb)
    x = x + outputs.pop()
    for kind, p in params["u_layers"]:
        # unet=True -> a skip connection follows every u-layer; for "res" layers it
        # is fused into the FF-block epilogue, for "up" layers it is a cheap XLA add.
        x = apply_layer(kind, p, x, emb, skip=outputs.pop())
    assert not outputs

    x = tln(x, params["norm_s"], params["norm_m"])
    x = pw_conv(x, params["final_w1"], params["final_b1"], act="relu")
    x = pw_conv(x, params["final_w2"], params["final_b2"], out_dtype=jnp.float32)
    return x[:, : cfg["out_channels"], :]


# -----------------------------------------------------------------------------
# Main
# -----------------------------------------------------------------------------
if __name__ == "__main__":
    cfg = dict(
        in_channels=1, out_channels=1,
        d_model=16, n_layers=1, pool=[2, 2], expand=2, ff=2,
        embed_in=16, embed_mid=32, embed_out=32,
        L=16,
    )
    B = 2
    key = jax.random.PRNGKey(0)
    k_audio, k_steps = jax.random.split(key)
    audio = jax.random.normal(k_audio, (B, cfg["in_channels"], cfg["L"]), jnp.float32)
    diffusion_steps = jax.random.randint(k_steps, (B, 1), 0, 50).astype(jnp.float32)

    params = init_sashimi_params(cfg)
    out = sashimi_forward(params, cfg, audio, diffusion_steps)
    out = jax.block_until_ready(out)

    assert out.shape == (B, cfg["out_channels"], cfg["L"]), out.shape
    assert bool(jnp.all(jnp.isfinite(out)))
    print("KERNEL_OK")
</pallas_src>

<mosaic_0001>
module attributes {stable_mosaic.version = 11 : i64} {
  func.func @_pw_conv_kernel(%arg0: i32, %arg1: i32, %arg2: memref<1x1x16xf32, #tpu.memory_space<vmem>>, %arg3: memref<16x1xbf16, #tpu.memory_space<vmem>>, %arg4: memref<16x1xf32, #tpu.memory_space<vmem>>, %arg5: memref<1x16x16xbf16, #tpu.memory_space<vmem>>) attributes {dimension_semantics = [#tpu.dimension_semantics<parallel>, #tpu.dimension_semantics<parallel>], iteration_bounds = array<i64: 2, 1>, scalar_prefetch = 0 : i64, scratch_operands = 0 : i64, tpu.core_type = #tpu.core_type<tc>, window_params = [{transform_indices = @transform_0, window_bounds = array<i64: 1, 1, 16>}, {pipeline_mode = #tpu.pipeline_mode<synchronous>, transform_indices = @transform_1, window_bounds = array<i64: 16, 1>}, {pipeline_mode = #tpu.pipeline_mode<synchronous>, transform_indices = @transform_2, window_bounds = array<i64: 16, 1>}, {transform_indices = @transform_3, window_bounds = array<i64: 1, 16, 16>}]} {
    %c0 = arith.constant 0 : index
    %c0_0 = arith.constant 0 : index
    %c0_1 = arith.constant 0 : index
    %0 = vector.load %arg2[%c0, %c0_0, %c0_1] : memref<1x1x16xf32, #tpu.memory_space<vmem>>, vector<1x1x16xf32>
    %1 = vector.shape_cast %0 : vector<1x1x16xf32> to vector<1x16xf32>
    %c0_2 = arith.constant 0 : index
    %c0_3 = arith.constant 0 : index
    %2 = vector.load %arg3[%c0_2, %c0_3] : memref<16x1xbf16, #tpu.memory_space<vmem>>, vector<16x1xbf16>
    %3 = arith.extf %2 : vector<16x1xbf16> to vector<16x1xf32>
    %4 = vector.broadcast %3 : vector<16x1xf32> to vector<16x16xf32>
    %5 = vector.broadcast %1 : vector<1x16xf32> to vector<16x16xf32>
    %6 = arith.mulf %4, %5 : vector<16x16xf32>
    %c0_4 = arith.constant 0 : index
    %c0_5 = arith.constant 0 : index
    %7 = vector.load %arg4[%c0_4, %c0_5] : memref<16x1xf32, #tpu.memory_space<vmem>>, vector<16x1xf32>
    %8 = vector.broadcast %7 : vector<16x1xf32> to vector<16x16xf32>
    %9 = arith.addf %6, %8 : vector<16x16xf32>
    %cst = arith.constant 0.000000e+00 : f32
    %10 = vector.broadcast %cst : f32 to vector<16x16xf32>
    %11 = arith.maximumf %9, %10 : vector<16x16xf32>
    %12 = arith.truncf %11 : vector<16x16xf32> to vector<16x16xbf16>
    %c0_6 = arith.constant 0 : index
    %c0_7 = arith.constant 0 : index
    %c0_8 = arith.constant 0 : index
    %13 = vector.load %arg5[%c0_6, %c0_7, %c0_8] : memref<1x16x16xbf16, #tpu.memory_space<vmem>>, vector<1x16x16xbf16>
    %14 = vector.shape_cast %13 : vector<1x16x16xbf16> to vector<16x16xbf16>
    %15 = vector.shape_cast %12 : vector<16x16xbf16> to vector<1x16x16xbf16>
    tpu.vector_store %arg5[%c0_6, %c0_7, %c0_8], %15 {strides = array<i32>} : memref<1x16x16xbf16, #tpu.memory_space<vmem>>, vector<1x16x16xbf16>,
    return
  }
  func.func @transform_0(%arg0: i32, %arg1: i32) -> (i32, i32, i32) {
    %c0_i32 = arith.constant 0 : i32
    %c0_i32_0 = arith.constant 0 : i32
    return %arg0, %c0_i32, %arg1 : i32, i32, i32
  }
  func.func @transform_1(%arg0: i32, %arg1: i32) -> (i32, i32) {
    %c0_i32 = arith.constant 0 : i32
    %c0_i32_0 = arith.constant 0 : i32
    %c0_i32_1 = arith.constant 0 : i32
    return %c0_i32, %c0_i32_0 : i32, i32
  }
  func.func @transform_2(%arg0: i32, %arg1: i32) -> (i32, i32) {
    %c0_i32 = arith.constant 0 : i32
    %c0_i32_0 = arith.constant 0 : i32
    %c0_i32_1 = arith.constant 0 : i32
    return %c0_i32, %c0_i32_0 : i32, i32
  }
  func.func @transform_3(%arg0: i32, %arg1: i32) -> (i32, i32, i32) {
    %c0_i32 = arith.constant 0 : i32
    %c0_i32_0 = arith.constant 0 : i32
    return %arg0, %c0_i32, %arg1 : i32, i32, i32
  }
}

</mosaic_0001>

<bundles_post_ra>
// kernel: tpu_custom_call.1
= control target key start
LH: loop header
LB: loop body
LE: loop exit
PB: predicated region body
PF: predicated region fallthrough
CT: control target
= control target key end

     0   :  { %8 = vsyncpa [#allocation3], 0  ;;  %s609_s0 = inlined_call_operand.vmem [shape: f32[2,1,16], index: 0, kind: input, shape index: {}]   ;;  %s610_s1 = inlined_call_operand.vmem [shape: bf16[16,1], index: 1, kind: input, shape index: {}]   ;;  %s611_s2 = inlined_call_operand.vmem [shape: f32[16,1], index: 2, kind: input, shape index: {}]   ;;  %s612_s3 = inlined_call_operand.hbm [shape: bf16[2,16,16], index: 3, kind: output, shape index: {}]  }
   0x1   :  { %10 = vsyncpa [#allocation3 + $0x1], 0  ;;  %s503_s12 = smov 0   ;;  %s505_s13 = smov 0  }
   0x2   :  { %s507_s14 = smov 0   ;;  %s509_s15 = smov 0  }
   0x3   :  { %s511_s16 = smov 0   ;;  %s513_s17 = smov 0  }
   0x4 LB: > { %s318_s18 = sadd.s32 4294967295, %s478_s17   ;;  %s319_s19 = sadd.s32 4294967294, %s478_s17   ;;  %s478_s17 = sphi %s513_s17, %s16_s17   ;;  %s474_s16 = sphi %s511_s16, %s619_s16   ;;  %s470_s15 = sphi %s509_s15, %s618_s15   ;;  %s466_s14 = sphi %s507_s14, %s617_s14   ;;  %s462_s13 = sphi %s505_s13, %s616_s13   ;;  %s458_s12 = sphi %s503_s12, %s615_s12  }
   0x5   : > { %s28_s20 = sadd.s32 1, %s474_s16  ;;  %s107_s21 = sadd.s32 1, %s466_s14 }
   0x6   : > { %p30_p0 = scmp.ge.s32.totalorder %s28_s20, 2  ;;  %p117_p1 = scmp.ne.s32.totalorder %s466_s14, %s462_s13 }
   0x7   : > { %p118_p2 = scmp.eq.s32.totalorder %s318_s18, 1  ;;  %p123_p3 = scmp.ne.s32.totalorder %s462_s13, %s458_s12 }
   0x8   : > { %s621_s20 = smov (%p30_p0, %s28_s20), 0  ;;  %p124_p5 = scmp.eq.s32.totalorder %s319_s19, 1 }
   0x9   : > { %p543_p4 = por %p118_p2, %p117_p1  ;;  %s102_s23 = ssub.s32 %s474_s16, %s621_s20 }
   0xa   : > { %p322_p6 = scmp.ge.s32.totalorder %s478_s17, 1  ;;  %p105_p7 = scmp.eq.s32.totalorder %s102_s23, 0 }
   0xb   : > { %p550_p8 = por %p124_p5, %p123_p3  ;;  %p157_p9 = scmp.lt.s32.totalorder %s478_s17, 3 }
   0xc   : > { %s556_s25 = scalar_select %p105_p7, %s466_s14, %s107_s21  }
   0xd   : > { %p158_p10 = pnand %p322_p6, %p157_p9 }
   0xe   : > { %p182_p11 = scmp.lt.s32.totalorder (!%p158_p10), %s470_s15, 1  ;;  %s179_s9 = sand.u32 (!%p158_p10), 1, %s462_s13  }
   0xf   : > { %161 = sbr.rel (%p158_p10) target bundleno = 158 (0x9e), region = 32  ;;  %s329_s10 = sshll.u32 (!%p158_p10), %s470_s15, 3 }
  0x10   : > { %s323_s11 = sshll.u32 (!%p158_p10), %s179_s9, 3  ;;  %s242_s21 = scalar_lea.hbm (!%p158_p10), %s612_s3, %s329_s10 }
  0x11   : > { %s181_s23 = scalar_lea.vmem (!%p158_p10), [#allocation2], %s323_s11  ;;  %s245_s27 = sshll.u32 (!%p158_p10), %s242_s21, 4  ;;  %s246_s27 = int_to_ptr.hbm [resolvable:$true] %s245_s27 }
  0x12   : > { %s243_s26 = sshll.u32 (!%p158_p10), %s181_s23, 4  ;;  %s414_s28 = sshra.s32 (!%p158_p10), %s246_s27, 4  ;;  %s244_s26 = int_to_ptr.vmem [resolvable:$true] %s243_s26  ;;  %s415_s28 = int_to_ptr.hbm [resolvable:$true] %s414_s28 }
  0x13   : > { %s416_s29 = scalar_lea.hbm (!%p158_p10), %s415_s28, 8  ;;  %s420_s5 = scalar_lea.hbm (!%p158_p10), %s612_s3, 16 }
  0x14   : > { %v331_v0 = vld [vmem:[%s610_s1] sm:$0xff]   ;;  %v209_v1 = vld [vmem:[%s611_s2 + $0x8] sm:$0xff]  ;;  %v480_v2 = vmov 0   ;;  %s183_s30 = scalar_select %p182_p11, %s470_s15, 1  ;;  %vm226_vm0 = vcmask 125952  }
  0x15   : > { %392 = vset.pattern.permute.xlu0 %v480_v2  ;;  %v332_v3 = vunpack.c.l.bf16 %v331_v0  ;;  %v333_v4 = vunpack.c.h.bf16 %v331_v0  ;;  %398 = vset.pattern.permute.xlu1 %v480_v2  ;;  %v208_v6 = vld [vmem:[%s611_s2] sm:$0xff]  ;;  %s230_s15 = scalar_lea.sflag [#allocation3], %s179_s9  ;;  %p417_p12 = scmp.ne.s32.totalorder %s415_s28, %s416_s29 }
  0x16   : > { %217 = vperm.xlu1 %398, %v209_v1   ;;  %s187_s6 = scalar_lea.vmem %s609_s0, %s183_s30  ;;  %p421_p1 = scmp.lt.s32.totalorder %s415_s28, %s612_s3 }
  0x17   : > { %v393_v5 = vpack.i.bf16 %v333_v4, %v332_v3  ;;  %v399_v7 = vld [vmem:[%s187_s6] ss:$0 sm:$0xff]  ;;  %p418_p13 = pnand %p417_p12, %p543_p4  ;;  %p422_p2 = scmp.lt.s32.totalorder %s420_s5, %s416_s29 }
  0x19   : > { %394 = vperm.xlu0 %392, %v393_v5   ;;  %p419_p0 = pneg %p418_p13  ;;  %p423_p3 = por %p422_p2, %p421_p1 }
  0x1b   : > { %p424_p5 = pnand %p423_p3, %p419_p0 }
  0x21   : > { %212 = vperm.xlu0 %392, %v208_v6  }
  0x88   : > { %v218_v10 = vpop.permute.xlu1 %217 }
  0x8b   : > { %v395_v8 = vpop.permute.xlu0 %394 }
  0x8c   : > { %v397_v9 = vunpack.i.h.bf16 %v395_v8  ;;  %v396_v11 = vunpack.i.l.bf16 %v395_v8 }
  0x8e   : > { %v207_v12 = vmul.f32 %v399_v7, %v397_v9  ;;  %v206_v15 = vmul.f32 %v399_v7, %v396_v11 }
  0x90   : > { %v221_v13 = vadd.f32 %v218_v10, %v207_v12 }
  0x92   : > { %v223_v14 = vmax.f32 %v221_v13, 0.0 }
  0x93   : > { %v213_v16 = vpop.permute.xlu0 %212 }
  0x94   : > { %v225_v17 = vpack.c.bf16 %v223_v14, %v223_v14  ;;  %v220_v18 = vadd.f32 %v213_v16, %v206_v15 }
  0x96   : > { %228 = vst.msk [vmem:[%s181_s23 + $0x4] sm:$0xf] %vm226_vm0, %v225_v17  ;;  %v222_v19 = vmax.f32 %v220_v18, 0.0 }
  0x98   : > { %v224_v20 = vpack.c.bf16 %v222_v19, %v222_v19 }
  0x9a   : > { %227 = vst.msk [vmem:[%s181_s23] sm:$0xf] %vm226_vm0, %v224_v20 }
  0x9b   : > { %427 = shalt.err (!%p424_p5)
}
  0x9c   : > { %s481_s8 = smov 64   ;;  %s482_s9 = smov 4  }
  0x9d   : > { %334 = dma.vmem_to_hbm [thread:$0]  (%p543_p4), %s244_s26, 128, %s246_s27, %s230_s15, %s481_s8, %s481_s8, %s482_s9  }
  0x9e PF: > { %p340_p6 = scmp.ge.s32.totalorder %s478_s17, 2  ;;  %s260_s10 = sand.u32 1, %s458_s12  }
  0x9f   : > { %s261_s11 = scalar_lea.sflag [#allocation3], %s260_s10 }
  0xa0   : > { %p337_p7 = pnand %p340_p6, %p550_p8 }
  0xa2   : > { %p338_p9 = pneg %p337_p7 }
  0xa4   : > { %453 = dma.done.wait (%p338_p9), %s261_s11, 128  }
  0xa5   : > { %455 = vsyncadd (%p338_p9), %s261_s11, 4294967168  ;;  %s16_s17 = sadd.s32 1, %s478_s17   ;;  %s615_s12 = smov %s462_s13 }
  0xa6   : > { %p13_p10 = scmp.ge.s32.totalorder %s16_s17, 4   ;;  %s616_s13 = smov %s466_s14 }
  0xa7   : > { %s617_s14 = smov %s556_s25  ;;  %s618_s15 = smov %s474_s16 }
  0xa8   : > { %s619_s16 = smov %s621_s20  ;;  %15 = sbr.rel (!%p13_p10) target bundleno = 4 (0x4), region = 67 }
  0xad   :  { %267 = vsyncpa [#allocation3], 1 }
  0xae   :  { %269 = vsyncpa [#allocation3 + $0x1], 1 }

</bundles_post_ra>
